<compile_context>
chip_gen: v7x
topology: tpu7x:2x2x1
jax: 0.10.0
libtpu: 0.0.40
codegen_flags: <defaults>
</compile_context>

<pallas_src>
import math

import jax
import jax.numpy as jnp
from jax.experimental import pallas as pl
from jax.experimental.pallas import tpu as pltpu

PAD_TOKEN = 0

_VMEM = pl.BlockSpec(memory_space=pltpu.MemorySpace.VMEM)
_SMEM = pl.BlockSpec(memory_space=pltpu.MemorySpace.SMEM)
_VMEM_LIMIT = 32 * 1024 * 1024  # safe on v5e/v6e (128 MiB) and v7x (64 MiB)


def _round_up(x, m):
    return ((x + m - 1) // m) * m


def _pick_tile(dim, candidates=(256, 128)):
    for c in candidates:
        if dim % c == 0:
            return c
    return dim


# ---------------------------------------------------------------------------
# Kernel 1: tiled linear (patch-embed stub projection), bf16 MXU / f32 acc
# ---------------------------------------------------------------------------
def _linear_kernel(x_ref, w_ref, b_ref, o_ref, acc_ref):
    k = pl.program_id(2)

    @pl.when(k == 0)
    def _():
        acc_ref[...] = jnp.zeros_like(acc_ref)

    acc_ref[...] += jnp.dot(
        x_ref[...], w_ref[...], preferred_element_type=jnp.float32
    )

    @pl.when(k == pl.num_programs(2) - 1)
    def _():
        o_ref[...] = acc_ref[...] + b_ref[...]


def pallas_linear(x_bf16, w_bf16, b):
    m, kdim = x_bf16.shape
    n = w_bf16.shape[1]
    tm = _pick_tile(m)
    tn = _pick_tile(n)
    tk = _pick_tile(kdim, (512, 256, 128))
    grid = (m // tm, n // tn, kdim // tk)
    return pl.pallas_call(
        _linear_kernel,
        out_shape=jax.ShapeDtypeStruct((m, n), jnp.float32),
        grid_spec=pltpu.PrefetchScalarGridSpec(
            num_scalar_prefetch=0,
            grid=grid,
            in_specs=[
                pl.BlockSpec((tm, tk), lambda i, j, k: (i, k)),
                pl.BlockSpec((tk, tn), lambda i, j, k: (k, j)),
                pl.BlockSpec((1, tn), lambda i, j, k: (0, j)),
            ],
            out_specs=pl.BlockSpec((tm, tn), lambda i, j, k: (i, j)),
            scratch_shapes=[pltpu.VMEM((tm, tn), jnp.float32)],
        ),
        compiler_params=pltpu.CompilerParams(
            dimension_semantics=("parallel", "parallel", "arbitrary"),
            vmem_limit_bytes=_VMEM_LIMIT,
        ),
    )(x_bf16, w_bf16, b)


# ---------------------------------------------------------------------------
# Kernel 2: fused contrastive branch
#   EmbedToLatents(image) + EmbedToLatents(text) + L2-normalize (rsqrt)
#   + sim = text @ image^T * exp(T) + symmetric CE(arange) -- one pallas_call.
# ---------------------------------------------------------------------------
def _contrastive_fused_kernel(img_ref, txt_ref, wi_ref, wt_ref, temp_ref, o_ref):
    # EmbedToLatents matmuls: bf16 into the MXU, f32 accumulation.
    img_lat = jnp.dot(
        img_ref[...].astype(jnp.bfloat16), wi_ref[...].astype(jnp.bfloat16),
        preferred_element_type=jnp.float32)
    txt_lat = jnp.dot(
        txt_ref[...].astype(jnp.bfloat16), wt_ref[...].astype(jnp.bfloat16),
        preferred_element_type=jnp.float32)

    # F.normalize(x, dim=-1): rsqrt (EUP slot) + multiply instead of sqrt+div.
    img_lat = img_lat * jax.lax.rsqrt(
        jnp.maximum(jnp.sum(img_lat * img_lat, axis=-1, keepdims=True), 1e-24))
    txt_lat = txt_lat * jax.lax.rsqrt(
        jnp.maximum(jnp.sum(txt_lat * txt_lat, axis=-1, keepdims=True), 1e-24))

    scale = jnp.exp(temp_ref[0])
    txt_b = txt_lat.astype(jnp.bfloat16)
    img_b = img_lat.astype(jnp.bfloat16)

    # Similarity diagonal computed directly from the latents (no O(B^2)
    # iota/compare/select and no extra cross-lane reduce on the sim matrix).
    diag = jnp.sum(
        txt_b.astype(jnp.float32) * img_b.astype(jnp.float32), axis=-1) * scale

    # sim[i, j] = <text_i, image_j>  (contract last dims; bf16 MXU, f32 acc)
    sim = jax.lax.dot_general(
        txt_b, img_b, (((1,), (1,)), ((), ())),
        preferred_element_type=jnp.float32) * scale

    lse_rows = jax.nn.logsumexp(sim, axis=-1)  # CE(sim,   arange)
    lse_cols = jax.nn.logsumexp(sim, axis=0)   # CE(sim.T, arange) w/o sim.T
    o_ref[0] = 0.5 * (jnp.mean(lse_rows - diag) + jnp.mean(lse_cols - diag))


def _contrastive_loss_xla(text_embed, image_embed, w_txt, w_img, temperature):
    txt = text_embed @ w_txt
    img = image_embed @ w_img
    txt = txt * jax.lax.rsqrt(
        jnp.maximum(jnp.sum(txt * txt, -1, keepdims=True), 1e-24))
    img = img * jax.lax.rsqrt(
        jnp.maximum(jnp.sum(img * img, -1, keepdims=True), 1e-24))
    sim = (txt @ img.T) * jnp.exp(temperature[0])
    diag = jnp.diagonal(sim)
    return 0.5 * (jnp.mean(jax.nn.logsumexp(sim, -1) - diag)
                  + jnp.mean(jax.nn.logsumexp(sim, 0) - diag))


def contrastive_loss_pallas(text_embed, image_embed, w_txt, w_img, temperature):
    b, h = text_embed.shape
    # Single-block kernel holds sim (B,B) f32 plus a few (B,H) latents in VMEM.
    # Guard against blowing v7x's 64 MiB VMEM at very large batch.
    vmem_needed = 4 * b * b + 6 * 4 * b * h
    if vmem_needed > 24 * 1024 * 1024:
        # TODO(synk): row-tiled contrastive kernel with online column-LSE for
        # very large B; plain-XLA fallback keeps correctness meanwhile.
        return _contrastive_loss_xla(text_embed, image_embed, w_txt, w_img,
                                     temperature)
    out = pl.pallas_call(
        _contrastive_fused_kernel,
        out_shape=jax.ShapeDtypeStruct((1,), jnp.float32),
        in_specs=[_VMEM, _VMEM, _VMEM, _VMEM, _SMEM],
        out_specs=_SMEM,
        compiler_params=pltpu.CompilerParams(vmem_limit_bytes=_VMEM_LIMIT),
    )(image_embed, text_embed, w_img, w_txt, temperature)
    return out[0]


# ---------------------------------------------------------------------------
# Kernel 3: caption loss = classification_layer + CE(ignore_index=PAD)
#   Grid (row tiles "parallel", vocab tiles "arbitrary"), online logsumexp in
#   VMEM scratch, bf16 MXU / f32 softmax, per-row-tile partial sums in SMEM.
# ---------------------------------------------------------------------------
def _caption_loss_kernel(x_ref, w_ref, b_ref, tgt_ref, nll_ref, cnt_ref,
                         m_sc, l_sc, t_sc):
    k = pl.program_id(1)  # vocab axis (inner, "arbitrary")
    tv = w_ref.shape[1]
    n = x_ref.shape[0]

    @pl.when(k == 0)
    def _():
        m_sc[...] = jnp.full_like(m_sc, -jnp.inf)
        l_sc[...] = jnp.zeros_like(l_sc)
        t_sc[...] = jnp.zeros_like(t_sc)

    logits = (
        jnp.dot(x_ref[...], w_ref[...], preferred_element_type=jnp.float32)
        + b_ref[...]
    )  # (tn, tv) f32

    # online logsumexp over the vocab tiles
    m_prev = m_sc[...]
    m_new = jnp.maximum(m_prev, jnp.max(logits, axis=-1, keepdims=True))
    # TODO(synk): on v6e/v7x a bf16 exp roughly doubles EUP throughput once the
    # kernel is compute-bound; kept f32 so the same kernel is exact on v5e.
    l_sc[...] = l_sc[...] * jnp.exp(m_prev - m_new) + jnp.sum(
        jnp.exp(logits - m_new), axis=-1, keepdims=True
    )
    m_sc[...] = m_new

    # target-logit gather scoped to this vocab tile
    tgt = tgt_ref[...]  # (tn, 1) int32
    col_ids = jax.lax.broadcasted_iota(jnp.int32, (n, tv), 1) + k * tv
    t_sc[...] += jnp.sum(
        jnp.where(col_ids == tgt, logits, 0.0), axis=-1, keepdims=True
    )

    @pl.when(k == pl.num_programs(1) - 1)
    def _():
        lse = m_sc[...] + jnp.log(l_sc[...])
        valid = (tgt != PAD_TOKEN).astype(jnp.float32)
        nll = (lse - t_sc[...]) * valid
        nll_ref[0] = jnp.sum(nll)
        cnt_ref[0] = jnp.sum(valid)


def caption_loss_pallas(feats, w_bf16, b, targets, *, row_tile=256):
    n, h = feats.shape
    v = w_bf16.shape[1]

    # sublane-dense / row-tile-dense rows; padded rows carry PAD targets.
    if n <= row_tile:
        n_pad = _round_up(n, 8)
        tn = n_pad
    else:
        n_pad = _round_up(n, row_tile)
        tn = row_tile
    if n_pad != n:
        feats = jnp.pad(feats, ((0, n_pad - n), (0, 0)))
        targets = jnp.pad(targets, ((0, n_pad - n), (0, 0)),
                          constant_values=PAD_TOKEN)
    n_row_tiles = n_pad // tn

    # vocab tile: single block up to 2048 lanes; else largest dense divisor.
    if v <= 2048:
        tv = v
    else:
        tv = next(c for c in (2048, 1024, 512, 256, 128, v) if v % c == 0)
    n_v_tiles = v // tv

    w_spec_kwargs = {}
    if n_v_tiles > 2:
        # deep vocab grid -> hide weight-stream DMA with a 3-deep buffer
        w_spec_kwargs["pipeline_mode"] = pl.Buffered(3)
    w_spec = pl.BlockSpec((h, tv), lambda i, k: (0, k), **w_spec_kwargs)

    nll, cnt = pl.pallas_call(
        _caption_loss_kernel,
        out_shape=(jax.ShapeDtypeStruct((n_row_tiles,), jnp.float32),
                   jax.ShapeDtypeStruct((n_row_tiles,), jnp.float32)),
        grid_spec=pltpu.PrefetchScalarGridSpec(
            num_scalar_prefetch=0,
            grid=(n_row_tiles, n_v_tiles),
            in_specs=[
                pl.BlockSpec((tn, h), lambda i, k: (i, 0)),   # activations
                w_spec,                                       # weight vocab tile
                pl.BlockSpec((1, tv), lambda i, k: (0, k)),   # bias vocab tile
                pl.BlockSpec((tn, 1), lambda i, k: (i, 0)),   # targets
            ],
            out_specs=(
                pl.BlockSpec((1,), lambda i, k: (i,),
                             memory_space=pltpu.MemorySpace.SMEM),
                pl.BlockSpec((1,), lambda i, k: (i,),
                             memory_space=pltpu.MemorySpace.SMEM),
            ),
            scratch_shapes=[
                pltpu.VMEM((tn, 1), jnp.float32),  # running max
                pltpu.VMEM((tn, 1), jnp.float32),  # running sum
                pltpu.VMEM((tn, 1), jnp.float32),  # target logit
            ],
        ),
        compiler_params=pltpu.CompilerParams(
            dimension_semantics=("parallel", "arbitrary"),
            vmem_limit_bytes=_VMEM_LIMIT,
        ),
    )(feats.astype(jnp.bfloat16), w_bf16, b, targets)

    total = jnp.sum(nll)
    count = jnp.sum(cnt)
    # NOTE: PyTorch CE(mean, ignore_index) returns NaN if all targets are PAD;
    # here we return 0 in that (degenerate) case.
    return total / jnp.maximum(count, 1.0)


# ---------------------------------------------------------------------------
# Plain-JAX glue (positional encoding, parameters, encoder/decoder stubs)
# ---------------------------------------------------------------------------
def positional_encoding(x):
    # x: (S, B, H) -- standard sinusoidal PE (dropout omitted); assumes even H.
    s, _, h = x.shape
    pos = jnp.arange(s, dtype=jnp.float32)[:, None]
    div = jnp.exp(jnp.arange(0, h, 2, dtype=jnp.float32) * (-math.log(10000.0) / h))
    pe = jnp.zeros((s, h), jnp.float32)
    pe = pe.at[:, 0::2].set(jnp.sin(pos * div))
    pe = pe.at[:, 1::2].set(jnp.cos(pos * div))
    return x + pe[:, None, :]


class PallasCaptionModel:
    def __init__(self, key, vocab_size=512, hdim=128, img_channels=3, patch=4,
                 contrastive_loss_weight=0.5):
        self.hdim = hdim
        self.vocab_size = vocab_size
        self.patch = patch
        self.contrastive_loss_weight = contrastive_loss_weight
        self.caption_loss_weight = 1.0 - contrastive_loss_weight

        ks = jax.random.split(key, 8)
        patch_dim = patch * patch * img_channels
        s = lambda d: 1.0 / math.sqrt(d)

        # nn.Embedding(len(vocab), hdim)
        self.embedding = jax.random.normal(ks[0], (vocab_size, hdim), jnp.float32)
        # text_cls_token = nn.Parameter(torch.randn(hdim))
        self.text_cls_token = jax.random.normal(ks[1], (hdim,), jnp.float32)
        # temperature = nn.Parameter([1.0])
        self.temperature = jnp.array([1.0], jnp.float32)
        # EmbedToLatents(hdim, hdim): Linear(hdim, hdim, bias=False), stored (in, out)
        self.image_to_latents_w = jax.random.uniform(
            ks[2], (hdim, hdim), jnp.float32, -s(hdim), s(hdim))
        self.text_to_latents_w = jax.random.uniform(
            ks[3], (hdim, hdim), jnp.float32, -s(hdim), s(hdim))
        # classification_layer = nn.Linear(hdim, len(vocab))
        self.cls_w = jax.random.uniform(
            ks[4], (hdim, vocab_size), jnp.float32, -s(hdim), s(hdim))
        self.cls_b = jax.random.uniform(
            ks[5], (1, vocab_size), jnp.float32, -s(hdim), s(hdim))
        # image-encoder stub patch projection
        self.img_w = jax.random.uniform(
            ks[6], (patch_dim, hdim), jnp.float32, -s(patch_dim), s(patch_dim))
        self.img_b = jnp.zeros((1, hdim), jnp.float32)

        # persistent bf16 copies of matmul weights (no per-step cast / HBM pass)
        self.cls_w_bf16 = self.cls_w.astype(jnp.bfloat16)
        self.img_w_bf16 = self.img_w.astype(jnp.bfloat16)

    # ---- encoder / decoder stubs --------------------------------------
    def image_encoder(self, images):
        # TODO(synk): real CVT encoder not provided; patch-embed + mean-pool stub.
        b, h, w, c = images.shape
        p = self.patch
        patches = images.reshape(b, h // p, p, w // p, p, c)
        patches = patches.transpose(0, 1, 3, 2, 4, 5).reshape(
            b, (h // p) * (w // p), p * p * c)
        n_img = patches.shape[1]
        tok = pallas_linear(
            patches.reshape(b * n_img, p * p * c).astype(jnp.bfloat16),
            self.img_w_bf16, self.img_b)
        image_tokens = tok.reshape(b, n_img, self.hdim)
        image_embed = jnp.mean(image_tokens, axis=1)          # (B, H)
        return image_tokens, image_embed

    def text_encoder(self, tokens):
        # TODO(synk): transformer TextEncoder not provided; embedding + cls-mean stub.
        text_tokens = self.embedding[tokens]                   # (B, S, H)
        text_embed = jnp.mean(text_tokens, axis=1) + self.text_cls_token[None, :]
        return text_tokens, text_embed

    def decoder(self, tgt, memory):
        # TODO(synk): FTransformerDecoder not provided; cross-context additive stub.
        return tgt + jnp.mean(memory, axis=0, keepdims=True)   # (S, B, H)

    # ---- forward (training loss), mirrors Model.forward ---------------
    def forward(self, images, teaching_force):
        b = images.shape[0]
        image_tokens, image_embed = self.image_encoder(images)
        text_tokens, text_embed = self.text_encoder(teaching_force)

        # contrastive branch (fused in one kernel; XLA fallback only at huge B)
        contrastive = contrastive_loss_pallas(
            text_embed, image_embed,
            self.text_to_latents_w, self.image_to_latents_w,
            self.temperature)
        contrastive = contrastive * self.contrastive_loss_weight

        # caption branch
        tgt = positional_encoding(jnp.transpose(text_tokens, (1, 0, 2)))   # (S, B, H)
        memory = jnp.transpose(image_tokens, (1, 0, 2))                    # (Nimg, B, H)
        output = self.decoder(tgt, memory)                                 # (S, B, H)
        s = output.shape[0]
        # logits 'n b c' -> 'b c n', CE(logits[:, :, :-1], teaching_force[:, 1:])
        feats = jnp.transpose(output[: s - 1], (1, 0, 2)).reshape(
            b * (s - 1), self.hdim)
        targets = teaching_force[:, 1:].reshape(b * (s - 1), 1).astype(jnp.int32)
        caption = caption_loss_pallas(feats, self.cls_w_bf16, self.cls_b, targets)
        caption = caption * self.caption_loss_weight

        return contrastive + caption


# ---------------------------------------------------------------------------
if __name__ == "__main__":
    key = jax.random.PRNGKey(0)
    k_model, k_img, k_txt = jax.random.split(key, 3)

    B, S, H = 2, 8, 128      # hdim lane-dense (multiple of 128)
    VOCAB = 512              # vocab lane-dense (multiple of 128)
    IMG = 16                 # 16x16 image, 3 channels, patch 4 -> 16 image tokens

    model = PallasCaptionModel(k_model, vocab_size=VOCAB, hdim=H)

    images = jax.random.normal(k_img, (B, IMG, IMG, 3), jnp.float32)
    teaching_force = jax.random.randint(k_txt, (B, S), 1, VOCAB, jnp.int32)
    # add some PAD tokens (ignore_index) at the tail of one sequence
    teaching_force = teaching_force.at[1, -2:].set(PAD_TOKEN)

    loss = model.forward(images, teaching_force)
    loss = jax.block_until_ready(loss)
    assert jnp.isfinite(loss), f"non-finite loss: {loss}"
    print("KERNEL_OK")
</pallas_src>

<mosaic_0001>
module attributes {stable_mosaic.version = 11 : i64} {
  func.func @_linear_kernel(%arg0: i32, %arg1: i32, %arg2: i32, %arg3: memref<32x48xbf16, #tpu.memory_space<vmem>>, %arg4: memref<48x128xbf16, #tpu.memory_space<vmem>>, %arg5: memref<1x128xf32, #tpu.memory_space<vmem>>, %arg6: memref<32x128xf32, #tpu.memory_space<vmem>>, %arg7: memref<32x128xf32, #tpu.memory_space<vmem>>) attributes {dimension_semantics = [#tpu.dimension_semantics<parallel>, #tpu.dimension_semantics<parallel>, #tpu.dimension_semantics<arbitrary>], iteration_bounds = array<i64: 1, 1, 1>, scalar_prefetch = 0 : i64, scratch_operands = 1 : i64, tpu.core_type = #tpu.core_type<tc>, window_params = [{transform_indices = @transform_0, window_bounds = array<i64: 32, 48>}, {transform_indices = @transform_1, window_bounds = array<i64: 48, 128>}, {transform_indices = @transform_2, window_bounds = array<i64: 1, 128>}, {transform_indices = @transform_3, window_bounds = array<i64: 32, 128>}]} {
    %c0_i32 = arith.constant 0 : i32
    %0 = arith.cmpi eq, %arg2, %c0_i32 : i32
    %1 = arith.extui %0 : i1 to i32
    %c0_i32_0 = arith.constant 0 : i32
    %2 = arith.cmpi ne, %1, %c0_i32_0 : i32
    scf.if %2 {
      %cst_10 = arith.constant 0.000000e+00 : f32
      %12 = vector.broadcast %cst_10 : f32 to vector<32x128xf32>
      %c0_11 = arith.constant 0 : index
      %c0_12 = arith.constant 0 : index
      %13 = vector.load %arg7[%c0_11, %c0_12] : memref<32x128xf32, #tpu.memory_space<vmem>>, vector<32x128xf32>
      tpu.vector_store %arg7[%c0_11, %c0_12], %12 {strides = array<i32>} : memref<32x128xf32, #tpu.memory_space<vmem>>, vector<32x128xf32>,
    } else {
    }
    %c0 = arith.constant 0 : index
    %c0_1 = arith.constant 0 : index
    %3 = vector.load %arg7[%c0, %c0_1] : memref<32x128xf32, #tpu.memory_space<vmem>>, vector<32x128xf32>
    %c0_2 = arith.constant 0 : index
    %c0_3 = arith.constant 0 : index
    %4 = vector.load %arg3[%c0_2, %c0_3] : memref<32x48xbf16, #tpu.memory_space<vmem>>, vector<32x48xbf16>
    %c0_4 = arith.constant 0 : index
    %c0_5 = arith.constant 0 : index
    %5 = vector.load %arg4[%c0_4, %c0_5] : memref<48x128xbf16, #tpu.memory_space<vmem>>, vector<48x128xbf16>
    %cst = arith.constant dense<0.000000e+00> : vector<32x128xf32>
    %6 = tpu.matmul %4, %5, %cst {dimension_numbers = #tpu.dot_dimension_numbers<[1], [0], [0], [1], [0, 0, 1, 1], [], []>} : vector<32x48xbf16>, vector<48x128xbf16>, vector<32x128xf32> -> vector<32x128xf32>
    %7 = arith.addf %3, %6 : vector<32x128xf32>
    %c0_6 = arith.constant 0 : index
    %c0_7 = arith.constant 0 : index
    %8 = vector.load %arg7[%c0_6, %c0_7] : memref<32x128xf32, #tpu.memory_space<vmem>>, vector<32x128xf32>
    tpu.vector_store %arg7[%c0_6, %c0_7], %7 {strides = array<i32>} : memref<32x128xf32, #tpu.memory_space<vmem>>, vector<32x128xf32>,
    %c0_i32_8 = arith.constant 0 : i32
    %9 = arith.cmpi eq, %arg2, %c0_i32_8 : i32
    %10 = arith.extui %9 : i1 to i32
    %c0_i32_9 = arith.constant 0 : i32
    %11 = arith.cmpi ne, %10, %c0_i32_9 : i32
    scf.if %11 {
      %c0_10 = arith.constant 0 : index
      %c0_11 = arith.constant 0 : index
      %12 = vector.load %arg7[%c0_10, %c0_11] : memref<32x128xf32, #tpu.memory_space<vmem>>, vector<32x128xf32>
      %c0_12 = arith.constant 0 : index
      %c0_13 = arith.constant 0 : index
      %13 = vector.load %arg5[%c0_12, %c0_13] : memref<1x128xf32, #tpu.memory_space<vmem>>, vector<1x128xf32>
      %14 = vector.broadcast %13 : vector<1x128xf32> to vector<32x128xf32>
      %15 = arith.addf %12, %14 : vector<32x128xf32>
      %c0_14 = arith.constant 0 : index
      %c0_15 = arith.constant 0 : index
      %16 = vector.load %arg6[%c0_14, %c0_15] : memref<32x128xf32, #tpu.memory_space<vmem>>, vector<32x128xf32>
      tpu.vector_store %arg6[%c0_14, %c0_15], %15 {strides = array<i32>} : memref<32x128xf32, #tpu.memory_space<vmem>>, vector<32x128xf32>,
    } else {
    }
    return
  }
  func.func @transform_0(%arg0: i32, %arg1: i32, %arg2: i32) -> (i32, i32) {
    %c0_i32 = arith.constant 0 : i32
    return %arg0, %arg2 : i32, i32
  }
  func.func @transform_1(%arg0: i32, %arg1: i32, %arg2: i32) -> (i32, i32) {
    %c0_i32 = arith.constant 0 : i32
    return %arg2, %arg1 : i32, i32
  }
  func.func @transform_2(%arg0: i32, %arg1: i32, %arg2: i32) -> (i32, i32) {
    %c0_i32 = arith.constant 0 : i32
    %c0_i32_0 = arith.constant 0 : i32
    return %c0_i32, %arg1 : i32, i32
  }
  func.func @transform_3(%arg0: i32, %arg1: i32, %arg2: i32) -> (i32, i32) {
    %c0_i32 = arith.constant 0 : i32
    return %arg0, %arg1 : i32, i32
  }
}

</mosaic_0001>

<bundles_post_ra>
// kernel: tpu_custom_call.1
= control target key start
LH: loop header
LB: loop body
LE: loop exit
PB: predicated region body
PF: predicated region fallthrough
CT: control target
= control target key end

     0   :  { %8 = vsyncpa [#allocation4], 0  ;;  %s371_s0 = inlined_call_operand.hbm [shape: bf16[32,48], index: 0, kind: input, shape index: {}]   ;;  %s372_s1 = inlined_call_operand.hbm [shape: bf16[48,128], index: 1, kind: input, shape index: {}]   ;;  %s373_s2 = inlined_call_operand.vmem [shape: f32[1,128], index: 2, kind: input, shape index: {}]   ;;  %s374_s3 = inlined_call_operand.hbm [shape: f32[32,128], index: 3, kind: output, shape index: {}]  }
   0x1   :  { %9 = vsyncpa [#allocation7], 0 }
   0x2   :  { %10 = vsyncpa [#allocation5], 0  ;;  %s305_s12 = smov [#allocation3]   ;;  %s233_s16 = scalar_lea.hbm %s371_s0, 256 }
   0x3   :  { %s16_s13 = sshll.u32 %s305_s12, 4  ;;  %p234_p0 = scmp.ne.s32.totalorder %s371_s0, %s233_s16  ;;  %s17_s13 = int_to_ptr.vmem [resolvable:$true] %s16_s13 }
   0x4   :  { %p237_p1 = scmp.lt.u32.totalorder %s233_s16, %s371_s0 }
   0x6   :  { %p239_p2 = pnand %p237_p1, %p234_p0 }
   0x8   :  { %242 = shalt.err (!%p239_p2)
}
   0x9   :  { %s243_s21 = scalar_lea.vmem %s17_s13, 256  ;;  %p248_p4 = scmp.lt.s32.totalorder %s17_s13, %s17_s13 }
   0xa   :  { %p244_p3 = scmp.ne.s32.totalorder %s17_s13, %s243_s21  ;;  %p249_p5 = scmp.lt.s32.totalorder %s243_s21, %s243_s21 }
   0xc   :  { %p250_p6 = por %p249_p5, %p248_p4 }
   0xe   :  { %p251_p7 = pnand %p250_p6, %p244_p3 }
  0x10   :  { %254 = shalt.err (!%p251_p7)
}
  0x11   :  { %s306_s22 = smov 64   ;;  %s307_s23 = smov 4  }
  0x12   :  { %22 = dma.hbm_to_vmem [thread:$0]  %s371_s0, 256, %s17_s13, [#allocation4], %s306_s22, %s306_s22, %s307_s23  }
  0x13   :  { %s308_s26 = smov [#allocation6]   ;;  %s255_s30 = scalar_lea.hbm %s372_s1, 384 }
  0x14   :  { %s28_s27 = sshll.u32 %s308_s26, 4  ;;  %p256_p8 = scmp.ne.s32.totalorder %s372_s1, %s255_s30  ;;  %s29_s27 = int_to_ptr.vmem [resolvable:$true] %s28_s27 }
  0x15   :  { %p259_p9 = scmp.lt.u32.totalorder %s255_s30, %s372_s1 }
  0x17   :  { %p261_p10 = pnand %p259_p9, %p256_p8 }
  0x19   :  { %264 = shalt.err (!%p261_p10)
}
  0x1a   :  { %s265_s8 = scalar_lea.vmem %s29_s27, 384  ;;  %p270_p12 = scmp.lt.s32.totalorder %s29_s27, %s29_s27 }
  0x1b   :  { %p266_p11 = scmp.ne.s32.totalorder %s29_s27, %s265_s8  ;;  %p271_p13 = scmp.lt.s32.totalorder %s265_s8, %s265_s8 }
  0x1d   :  { %p272_p0 = por %p271_p13, %p270_p12 }
  0x1f   :  { %p273_p1 = pnand %p272_p0, %p266_p11 }
  0x21   :  { %276 = shalt.err (!%p273_p1)
}
  0x22   :  { %34 = dma.hbm_to_vmem [thread:$0]  %s372_s1, 384, %s29_s27, [#allocation7], %s306_s22, %s306_s22, %s307_s23  }
  0x23   :  { %299 = dma.done.wait [#allocation4], 256  }
  0x24   :  { %300 = vsyncadd [#allocation4], 4294967040 }
  0x25   :  { %301 = dma.done.wait [#allocation7], 384  }
  0x26   :  { %302 = vsyncadd [#allocation7], 4294966912  ;;  %v228_v0 = vld [vmem:[#allocation6] sm:$0xff]   ;;  %v229_v1 = vld [vmem:[#allocation6 + $0x8] sm:$0xff]   ;;  %vm94_vm0 = vcmask 392192   ;;  %s309_s11 = smov [#allocation8]  }
  0x27   :  { %211 = vmatprep.subr.bf16.mxu0 %v228_v0  ;;  %v231_v2 = vld [vmem:[#allocation3] sm:$0xff]   ;;  %v232_v4 = vld [vmem:[#allocation3 + $0x8] sm:$0xff]   ;;  %s185_s12 = sshll.u32 %s309_s11, 4  ;;  %s186_s12 = int_to_ptr.vmem [resolvable:$true] %s185_s12 }
  0x28   :  { %212 = vmatpush3.bf16.msra.mxu0 %v228_v0  ;;  %v230_v3 = vld [vmem:[#allocation6 + $0x10] sm:$0xff]   ;;  %217 = vmatprep.mubr.msk.bf16.mxu0 %vm94_vm0, %v231_v2  ;;  %s277_s13 = scalar_lea.vmem %s186_s12, 512  ;;  %p282_p3 = scmp.lt.s32.totalorder %s186_s12, %s186_s12 }
  0x29   :  { %213 = vmatprep.subr.bf16.mxu0 %v229_v1  ;;  %v205_v5 = vld [vmem:[%s373_s2] ss:$0 sm:$0xff]  ;;  %p278_p2 = scmp.ne.s32.totalorder %s186_s12, %s277_s13  ;;  %p283_p4 = scmp.lt.s32.totalorder %s277_s13, %s277_s13 }
  0x2b   :  { %p284_p5 = por %p283_p4, %p282_p3 }
  0x2c   :  { %214 = vmatpush3.bf16.msra.mxu0 %v229_v1 }
  0x2d   :  { %215 = vmatprep.subr.bf16.mxu0 %v230_v3  ;;  %p285_p6 = pnand %p284_p5, %p278_p2 }
  0x30   :  { %216 = vmatpush3.bf16.msra.mxu0 %v230_v3 }
  0x33   :  { %218 = vmatmul.mubr.msk.bf16.vlgmr.msra.gmra.mrb[0].mxu0 %vm94_vm0, %v232_v4 }
 0x106   :  { %v219_v6 = vpop.f32.mrb[0].mxu0 }
 0x107   :  { %v174_v7 = vadd.f32 %v219_v6, %v205_v5  ;;  %v135_v8 = vpop.f32.mrb[1].mxu0 }
 0x108   :  { %v172_v9 = vadd.f32 %v205_v5, %v135_v8  ;;  %v220_v10 = vpop.f32.mrb[2].mxu0 }
 0x109   :  { %178 = vst [vmem:[#allocation8 + $0x10] sm:$0xff] %v174_v7  ;;  %v175_v11 = vadd.f32 %v220_v10, %v205_v5  ;;  %v138_v12 = vpop.f32.mrb[3].mxu0 }
 0x10a   :  { %176 = vst [vmem:[#allocation8] sm:$0xff] %v172_v9  ;;  %v173_v13 = vadd.f32 %v205_v5, %v138_v12 }
 0x10b   :  { %179 = vst [vmem:[#allocation8 + $0x18] sm:$0xff] %v175_v11 }
 0x10c   :  { %177 = vst [vmem:[#allocation8 + $0x8] sm:$0xff] %v173_v13 }
 0x10d   :  { %288 = shalt.err (!%p285_p6)
}
 0x10e   :  { %s289_s15 = scalar_lea.hbm %s374_s3, 512 }
 0x10f   :  { %p290_p7 = scmp.ne.s32.totalorder %s374_s3, %s289_s15  ;;  %p293_p8 = scmp.lt.u32.totalorder %s289_s15, %s374_s3 }
 0x111   :  { %p295_p9 = pnand %p293_p8, %p290_p7 }
 0x113   :  { %298 = shalt.err (!%p295_p9)
}
 0x114   :  { %s310_s20 = smov 128   ;;  %s311_s21 = smov 8  }
 0x115   :  { %191 = dma.vmem_to_hbm [thread:$0]  %s186_s12, 512, %s374_s3, [#allocation5], %s310_s20, %s310_s20, %s311_s21  }
 0x116   :  { %303 = dma.done.wait [#allocation5], 512  }
 0x117   :  { %304 = vsyncadd [#allocation5], 4294966784 }
 0x118   :  { %195 = vsyncpa [#allocation4], 1 }
 0x119   :  { %196 = vsyncpa [#allocation7], 1 }
 0x11a   :  { %197 = vsyncpa [#allocation5], 1 }

</bundles_post_ra>
